<compile_context>
chip_gen: v7x
topology: tpu7x:2x2x1
jax: 0.10.0
libtpu: 0.0.40
codegen_flags: <defaults>
</compile_context>

<pallas_src>
import jax
import jax.numpy as jnp
from jax import lax
from jax.experimental import pallas as pl
from jax.experimental.pallas import tpu as pltpu


# ---------------------------------------------------------------------------
# Fused kernel: scores tile  +  online LSE  +  target-logit gather  +  NLL
# ---------------------------------------------------------------------------
def fused_rec_kernel(u_ref, it_ref, b_ref, y_ref,
                     scores_ref, nll_ref,
                     m_sc, l_sc, t_sc):
    # u_ref      : (TB, D)   bf16  user-rep batch tile (resident across j)
    # it_ref     : (TN, D)   bf16  entity-embedding tile
    # b_ref      : (1, N)    f32   full bias, resident
    # y_ref      : (TB, 1)   i32   targets for this batch tile
    # scores_ref : (TB, TN)  f32   output scores tile
    # nll_ref    : (TB, 1)   f32   per-row NLL (written at last entity tile)
    # m_sc/l_sc/t_sc : (TB,1) f32  running max / sum-exp / target-logit scratch
    j = pl.program_id(1)
    tile_n = scores_ref.shape[-1]

    @pl.when(j == 0)
    def _init():
        m_sc[...] = jnp.full_like(m_sc, -jnp.inf)
        l_sc[...] = jnp.zeros_like(l_sc)
        t_sc[...] = jnp.zeros_like(t_sc)

    # (TB, D) . (TN, D) contracted on D -> (TB, TN); bf16 inputs, f32 acc (MXU).
    s = lax.dot_general(
        u_ref[...], it_ref[...],
        dimension_numbers=(((1,), (1,)), ((), ())),
        preferred_element_type=jnp.float32)

    # Add the bias slice for this entity tile (bias is fully resident in VMEM).
    if b_ref.shape[-1] == tile_n:                 # single entity tile: static path
        s = s + b_ref[...]
        col0 = j * tile_n
    else:                                         # lane-aligned dynamic slice
        col0 = pl.multiple_of(j * tile_n, tile_n)
        s = s + b_ref[:, pl.ds(col0, tile_n)]

    scores_ref[...] = s                           # f32 scores writeback (module output)

    # --- online log-sum-exp update (f32) ---
    m_new = jnp.maximum(m_sc[...], jnp.max(s, axis=-1, keepdims=True))
    l_sc[...] = (l_sc[...] * jnp.exp(m_sc[...] - m_new)
                 + jnp.sum(jnp.exp(s - m_new), axis=-1, keepdims=True))
    m_sc[...] = m_new

    # --- target logit via one-hot over global column ids (no dynamic gather) ---
    ids = col0 + lax.broadcasted_iota(jnp.int32, s.shape, 1)
    t_sc[...] += jnp.sum(jnp.where(ids == y_ref[...], s, 0.0),
                         axis=-1, keepdims=True)

    @pl.when(j == pl.num_programs(1) - 1)
    def _finalize():
        nll_ref[...] = m_sc[...] + jnp.log(l_sc[...]) - t_sc[...]


# ---------------------------------------------------------------------------
# Wrapper
# ---------------------------------------------------------------------------
def recommender_forward(user_rep, item_rep, rec_bias, y, *, tile_n=512, tile_b=None):
    """Returns (rec_loss, rec_scores) with the semantics of RecommenderModule."""
    B, D = user_rep.shape
    N, D2 = item_rep.shape
    assert D == D2

    if tile_b is None:
        tile_b = B
    assert B % tile_b == 0

    tile_n = min(tile_n, N)
    assert N % tile_n == 0
    assert tile_n == N or tile_n % 128 == 0

    # bf16 operand streams (MXU native, half the HBM bytes); math stays f32.
    u = user_rep.astype(jnp.bfloat16)
    it = item_rep.astype(jnp.bfloat16)
    bias2d = rec_bias.reshape(1, N).astype(jnp.float32)
    y2d = y.reshape(B, 1).astype(jnp.int32)

    grid = (B // tile_b, N // tile_n)

    scores, nll = pl.pallas_call(
        fused_rec_kernel,
        out_shape=(jax.ShapeDtypeStruct((B, N), jnp.float32),
                   jax.ShapeDtypeStruct((B, 1), jnp.float32)),
        grid_spec=pltpu.PrefetchScalarGridSpec(
            num_scalar_prefetch=0,
            grid=grid,
            in_specs=[
                pl.BlockSpec((tile_b, D), lambda i, j: (i, 0)),   # user-rep tile
                pl.BlockSpec((tile_n, D), lambda i, j: (j, 0)),   # item-rep tile
                pl.BlockSpec((1, N),      lambda i, j: (0, 0)),   # bias, resident
                pl.BlockSpec((tile_b, 1), lambda i, j: (i, 0)),   # targets
            ],
            out_specs=(
                pl.BlockSpec((tile_b, tile_n), lambda i, j: (i, j)),  # scores
                pl.BlockSpec((tile_b, 1),      lambda i, j: (i, 0)),  # per-row NLL
            ),
            scratch_shapes=[pltpu.VMEM((tile_b, 1), jnp.float32)] * 3,
        ),
        compiler_params=pltpu.CompilerParams(
            dimension_semantics=("parallel", "arbitrary")),
    )(u, it, bias2d, y2d)

    # CrossEntropyLoss mean reduction: trivial reduce over B scalars, kept in
    # the wrapper so the batch grid axis stays "parallel" (v7x megacore).
    rec_loss = jnp.mean(nll)
    return rec_loss, scores


if __name__ == "__main__":
    # Small deterministic shapes consistent with the module:
    #   config.user_emb_dim = D, config.n_entity = N.
    B, D, N = 8, 32, 256

    key = jax.random.PRNGKey(0)
    k_u, k_i, k_b, k_y = jax.random.split(key, 4)

    # Stand-ins for user_model.get_user_rep(batch, mode).
    user_rep = jax.random.normal(k_u, (B, D), dtype=jnp.float32)
    item_rep = jax.random.normal(k_i, (N, D), dtype=jnp.float32)
    # nn.Linear(user_emb_dim, n_entity).bias -> shape (n_entity,)
    rec_bias = 0.02 * jax.random.normal(k_b, (N,), dtype=jnp.float32)
    # batch['movie_to_rec'] targets
    y = jax.random.randint(k_y, (B,), 0, N, dtype=jnp.int32)
    assert bool(jnp.all((y >= 0) & (y < N))), "targets must lie in [0, n_entity)"

    rec_loss, rec_scores = recommender_forward(user_rep, item_rep, rec_bias, y)
    jax.block_until_ready((rec_loss, rec_scores))

    # Reference (plain JAX) on the same bf16-quantized operand streams.
    u_r = user_rep.astype(jnp.bfloat16).astype(jnp.float32)
    i_r = item_rep.astype(jnp.bfloat16).astype(jnp.float32)
    ref_scores = u_r @ i_r.T + rec_bias[None, :]
    ref_lse = jax.scipy.special.logsumexp(ref_scores, axis=-1)
    ref_tgt = jnp.take_along_axis(ref_scores, y[:, None], axis=-1)[:, 0]
    ref_loss = jnp.mean(ref_lse - ref_tgt)

    assert jnp.allclose(rec_scores, ref_scores, atol=1e-3, rtol=1e-3), "scores mismatch"
    assert jnp.allclose(rec_loss, ref_loss, atol=1e-4, rtol=1e-4), "loss mismatch"

    print("KERNEL_OK")
</pallas_src>

<mosaic_0001>
module attributes {stable_mosaic.version = 11 : i64} {
  func.func @fused_rec_kernel(%arg0: i32, %arg1: i32, %arg2: memref<8x32xbf16, #tpu.memory_space<vmem>>, %arg3: memref<256x32xbf16, #tpu.memory_space<vmem>>, %arg4: memref<1x256xf32, #tpu.memory_space<vmem>>, %arg5: memref<8x1xi32, #tpu.memory_space<vmem>>, %arg6: memref<8x256xf32, #tpu.memory_space<vmem>>, %arg7: memref<8x1xf32, #tpu.memory_space<vmem>>, %arg8: memref<8x1xf32, #tpu.memory_space<vmem>>, %arg9: memref<8x1xf32, #tpu.memory_space<vmem>>, %arg10: memref<8x1xf32, #tpu.memory_space<vmem>>) attributes {dimension_semantics = [#tpu.dimension_semantics<parallel>, #tpu.dimension_semantics<arbitrary>], iteration_bounds = array<i64: 1, 1>, scalar_prefetch = 0 : i64, scratch_operands = 3 : i64, tpu.core_type = #tpu.core_type<tc>, window_params = [{transform_indices = @transform_0, window_bounds = array<i64: 8, 32>}, {transform_indices = @transform_1, window_bounds = array<i64: 256, 32>}, {pipeline_mode = #tpu.pipeline_mode<synchronous>, transform_indices = @transform_2, window_bounds = array<i64: 1, 256>}, {transform_indices = @transform_3, window_bounds = array<i64: 8, 1>}, {transform_indices = @transform_4, window_bounds = array<i64: 8, 256>}, {transform_indices = @transform_5, window_bounds = array<i64: 8, 1>}]} {
    %c0_i32 = arith.constant 0 : i32
    %0 = arith.cmpi eq, %arg1, %c0_i32 : i32
    %1 = arith.extui %0 : i1 to i32
    %c0_i32_0 = arith.constant 0 : i32
    %2 = arith.cmpi ne, %1, %c0_i32_0 : i32
    scf.if %2 {
      %cst_30 = arith.constant 0xFF800000 : f32
      %44 = vector.broadcast %cst_30 : f32 to vector<8x1xf32>
      %c0_31 = arith.constant 0 : index
      %c0_32 = arith.constant 0 : index
      %45 = vector.load %arg8[%c0_31, %c0_32] : memref<8x1xf32, #tpu.memory_space<vmem>>, vector<8x1xf32>
      tpu.vector_store %arg8[%c0_31, %c0_32], %44 {strides = array<i32>} : memref<8x1xf32, #tpu.memory_space<vmem>>, vector<8x1xf32>,
      %cst_33 = arith.constant 0.000000e+00 : f32
      %46 = vector.broadcast %cst_33 : f32 to vector<8x1xf32>
      %c0_34 = arith.constant 0 : index
      %c0_35 = arith.constant 0 : index
      %47 = vector.load %arg9[%c0_34, %c0_35] : memref<8x1xf32, #tpu.memory_space<vmem>>, vector<8x1xf32>
      tpu.vector_store %arg9[%c0_34, %c0_35], %46 {strides = array<i32>} : memref<8x1xf32, #tpu.memory_space<vmem>>, vector<8x1xf32>,
      %cst_36 = arith.constant 0.000000e+00 : f32
      %48 = vector.broadcast %cst_36 : f32 to vector<8x1xf32>
      %c0_37 = arith.constant 0 : index
      %c0_38 = arith.constant 0 : index
      %49 = vector.load %arg10[%c0_37, %c0_38] : memref<8x1xf32, #tpu.memory_space<vmem>>, vector<8x1xf32>
      tpu.vector_store %arg10[%c0_37, %c0_38], %48 {strides = array<i32>} : memref<8x1xf32, #tpu.memory_space<vmem>>, vector<8x1xf32>,
    } else {
    }
    %c0 = arith.constant 0 : index
    %c0_1 = arith.constant 0 : index
    %3 = vector.load %arg2[%c0, %c0_1] : memref<8x32xbf16, #tpu.memory_space<vmem>>, vector<8x32xbf16>
    %c0_2 = arith.constant 0 : index
    %c0_3 = arith.constant 0 : index
    %4 = vector.load %arg3[%c0_2, %c0_3] : memref<256x32xbf16, #tpu.memory_space<vmem>>, vector<256x32xbf16>
    %cst = arith.constant dense<0.000000e+00> : vector<8x256xf32>
    %5 = tpu.matmul %3, %4, %cst {dimension_numbers = #tpu.dot_dimension_numbers<[1], [1], [0], [0], [0, 0, 1, 0], [], []>} : vector<8x32xbf16>, vector<256x32xbf16>, vector<8x256xf32> -> vector<8x256xf32>
    %c0_4 = arith.constant 0 : index
    %c0_5 = arith.constant 0 : index
    %6 = vector.load %arg4[%c0_4, %c0_5] : memref<1x256xf32, #tpu.memory_space<vmem>>, vector<1x256xf32>
    %7 = vector.broadcast %6 : vector<1x256xf32> to vector<8x256xf32>
    %8 = arith.addf %5, %7 : vector<8x256xf32>
    %c256_i32 = arith.constant 256 : i32
    %9 = arith.muli %arg1, %c256_i32 : i32
    %c0_6 = arith.constant 0 : index
    %c0_7 = arith.constant 0 : index
    %10 = vector.load %arg6[%c0_6, %c0_7] : memref<8x256xf32, #tpu.memory_space<vmem>>, vector<8x256xf32>
    tpu.vector_store %arg6[%c0_6, %c0_7], %8 {strides = array<i32>} : memref<8x256xf32, #tpu.memory_space<vmem>>, vector<8x256xf32>,
    %c0_8 = arith.constant 0 : index
    %c0_9 = arith.constant 0 : index
    %11 = vector.load %arg8[%c0_8, %c0_9] : memref<8x1xf32, #tpu.memory_space<vmem>>, vector<8x1xf32>
    %cst_10 = arith.constant dense<0xFF800000> : vector<8xf32>
    %12 = vector.multi_reduction <maximumf>, %8, %cst_10 [1] : vector<8x256xf32> to vector<8xf32>
    %13 = vector.shape_cast %12 : vector<8xf32> to vector<8x1xf32>
    %14 = arith.maximumf %11, %13 : vector<8x1xf32>
    %c0_11 = arith.constant 0 : index
    %c0_12 = arith.constant 0 : index
    %15 = vector.load %arg9[%c0_11, %c0_12] : memref<8x1xf32, #tpu.memory_space<vmem>>, vector<8x1xf32>
    %c0_13 = arith.constant 0 : index
    %c0_14 = arith.constant 0 : index
    %16 = vector.load %arg8[%c0_13, %c0_14] : memref<8x1xf32, #tpu.memory_space<vmem>>, vector<8x1xf32>
    %17 = arith.subf %16, %14 : vector<8x1xf32>
    %18 = math.exp %17 : vector<8x1xf32>
    %19 = arith.mulf %15, %18 : vector<8x1xf32>
    %20 = vector.broadcast %14 : vector<8x1xf32> to vector<8x256xf32>
    %21 = arith.subf %8, %20 : vector<8x256xf32>
    %22 = math.exp %21 : vector<8x256xf32>
    %cst_15 = arith.constant dense<0.000000e+00> : vector<8xf32>
    %23 = vector.multi_reduction <add>, %22, %cst_15 [1] : vector<8x256xf32> to vector<8xf32>
    %24 = vector.shape_cast %23 : vector<8xf32> to vector<8x1xf32>
    %25 = arith.addf %19, %24 : vector<8x1xf32>
    %c0_16 = arith.constant 0 : index
    %c0_17 = arith.constant 0 : index
    %26 = vector.load %arg9[%c0_16, %c0_17] : memref<8x1xf32, #tpu.memory_space<vmem>>, vector<8x1xf32>
    tpu.vector_store %arg9[%c0_16, %c0_17], %25 {strides = array<i32>} : memref<8x1xf32, #tpu.memory_space<vmem>>, vector<8x1xf32>,
    %c0_18 = arith.constant 0 : index
    %c0_19 = arith.constant 0 : index
    %27 = vector.load %arg8[%c0_18, %c0_19] : memref<8x1xf32, #tpu.memory_space<vmem>>, vector<8x1xf32>
    tpu.vector_store %arg8[%c0_18, %c0_19], %14 {strides = array<i32>} : memref<8x1xf32, #tpu.memory_space<vmem>>, vector<8x1xf32>,
    %28 = tpu.iota {dimensions = array<i32: 1>} : vector<8x256xi32>
    %29 = vector.broadcast %9 : i32 to vector<8x256xi32>
    %30 = arith.addi %29, %28 : vector<8x256xi32>
    %c0_20 = arith.constant 0 : index
    %c0_21 = arith.constant 0 : index
    %31 = vector.load %arg10[%c0_20, %c0_21] : memref<8x1xf32, #tpu.memory_space<vmem>>, vector<8x1xf32>
    %c0_22 = arith.constant 0 : index
    %c0_23 = arith.constant 0 : index
    %32 = vector.load %arg5[%c0_22, %c0_23] : memref<8x1xi32, #tpu.memory_space<vmem>>, vector<8x1xi32>
    %33 = vector.broadcast %32 : vector<8x1xi32> to vector<8x256xi32>
    %34 = arith.cmpi eq, %30, %33 : vector<8x256xi32>
    %cst_24 = arith.constant 0.000000e+00 : f32
    %35 = vector.broadcast %cst_24 : f32 to vector<8x256xf32>
    %36 = arith.select %34, %8, %35 : vector<8x256xi1>, vector<8x256xf32>
    %cst_25 = arith.constant dense<0.000000e+00> : vector<8xf32>
    %37 = vector.multi_reduction <add>, %36, %cst_25 [1] : vector<8x256xf32> to vector<8xf32>
    %38 = vector.shape_cast %37 : vector<8xf32> to vector<8x1xf32>
    %39 = arith.addf %31, %38 : vector<8x1xf32>
    %c0_26 = arith.constant 0 : index
    %c0_27 = arith.constant 0 : index
    %40 = vector.load %arg10[%c0_26, %c0_27] : memref<8x1xf32, #tpu.memory_space<vmem>>, vector<8x1xf32>
    tpu.vector_store %arg10[%c0_26, %c0_27], %39 {strides = array<i32>} : memref<8x1xf32, #tpu.memory_space<vmem>>, vector<8x1xf32>,
    %c0_i32_28 = arith.constant 0 : i32
    %41 = arith.cmpi eq, %arg1, %c0_i32_28 : i32
    %42 = arith.extui %41 : i1 to i32
    %c0_i32_29 = arith.constant 0 : i32
    %43 = arith.cmpi ne, %42, %c0_i32_29 : i32
    scf.if %43 {
      %c0_30 = arith.constant 0 : index
      %c0_31 = arith.constant 0 : index
      %44 = vector.load %arg8[%c0_30, %c0_31] : memref<8x1xf32, #tpu.memory_space<vmem>>, vector<8x1xf32>
      %c0_32 = arith.constant 0 : index
      %c0_33 = arith.constant 0 : index
      %45 = vector.load %arg9[%c0_32, %c0_33] : memref<8x1xf32, #tpu.memory_space<vmem>>, vector<8x1xf32>
      %46 = math.log %45 : vector<8x1xf32>
      %47 = arith.addf %44, %46 : vector<8x1xf32>
      %c0_34 = arith.constant 0 : index
      %c0_35 = arith.constant 0 : index
      %48 = vector.load %arg10[%c0_34, %c0_35] : memref<8x1xf32, #tpu.memory_space<vmem>>, vector<8x1xf32>
      %49 = arith.subf %47, %48 : vector<8x1xf32>
      %c0_36 = arith.constant 0 : index
      %c0_37 = arith.constant 0 : index
      %50 = vector.load %arg7[%c0_36, %c0_37] : memref<8x1xf32, #tpu.memory_space<vmem>>, vector<8x1xf32>
      tpu.vector_store %arg7[%c0_36, %c0_37], %49 {strides = array<i32>} : memref<8x1xf32, #tpu.memory_space<vmem>>, vector<8x1xf32>,
    } else {
    }
    return
  }
  func.func @transform_0(%arg0: i32, %arg1: i32) -> (i32, i32) {
    %c0_i32 = arith.constant 0 : i32
    %c0_i32_0 = arith.constant 0 : i32
    return %arg0, %c0_i32 : i32, i32
  }
  func.func @transform_1(%arg0: i32, %arg1: i32) -> (i32, i32) {
    %c0_i32 = arith.constant 0 : i32
    %c0_i32_0 = arith.constant 0 : i32
    return %arg1, %c0_i32 : i32, i32
  }
  func.func @transform_2(%arg0: i32, %arg1: i32) -> (i32, i32) {
    %c0_i32 = arith.constant 0 : i32
    %c0_i32_0 = arith.constant 0 : i32
    %c0_i32_1 = arith.constant 0 : i32
    return %c0_i32, %c0_i32_0 : i32, i32
  }
  func.func @transform_3(%arg0: i32, %arg1: i32) -> (i32, i32) {
    %c0_i32 = arith.constant 0 : i32
    %c0_i32_0 = arith.constant 0 : i32
    return %arg0, %c0_i32 : i32, i32
  }
  func.func @transform_4(%arg0: i32, %arg1: i32) -> (i32, i32) {
    %c0_i32 = arith.constant 0 : i32
    return %arg0, %arg1 : i32, i32
  }
  func.func @transform_5(%arg0: i32, %arg1: i32) -> (i32, i32) {
    %c0_i32 = arith.constant 0 : i32
    %c0_i32_0 = arith.constant 0 : i32
    return %arg0, %c0_i32 : i32, i32
  }
}

</mosaic_0001>

<bundles_post_ra>
// kernel: tpu_custom_call.1
= control target key start
LH: loop header
LB: loop body
LE: loop exit
PB: predicated region body
PF: predicated region fallthrough
CT: control target
= control target key end

     0   :  { %vm154_vm0 = vcmask 261120   ;;  %v424_v3 = vmov 0   ;;  %s555_s0 = inlined_call_operand.vmem [shape: bf16[8,32], index: 0, kind: input, shape index: {}]   ;;  %s556_s1 = inlined_call_operand.vmem [shape: bf16[256,32], index: 1, kind: input, shape index: {}]   ;;  %s557_s2 = inlined_call_operand.vmem [shape: f32[1,256], index: 2, kind: input, shape index: {}]   ;;  %s558_s3 = inlined_call_operand.vmem [shape: s32[8,1], index: 3, kind: input, shape index: {}]   ;;  %s559_s4 = inlined_call_operand.hbm [shape: f32[8,256], index: 4, kind: output, shape index: {0}]   ;;  %s560_s5 = inlined_call_operand.vmem [shape: f32[8,1], index: 5, kind: output, shape index: {1}]  }
   0x1   :  { %v376_v0 = vld [vmem:[%s556_s1 + $0x40] sm:$0xff]   ;;  %v378_v2 = vld [vmem:[%s556_s1 + $0x48] sm:$0xff]   ;;  %375 = vset.pattern.permute.xlu1 %v424_v3  ;;  %374 = vset.pattern.permute.xlu0 %v424_v3  ;;  %v380_v7 = vld [vmem:[%s556_s1 + $0x50] sm:$0xff]  }
   0x2   :  { %v377_v1 = vld [vmem:[%s556_s1] sm:$0xff]   ;;  %362 = vmatprep.subr.msk.bf16.mxu0 %vm154_vm0, %v376_v0  ;;  %v379_v5 = vld [vmem:[%s556_s1 + $0x8] sm:$0xff]   ;;  %v381_v8 = vld [vmem:[%s556_s1 + $0x10] sm:$0xff]  }
   0x3   :  { %v159_v4 = vsel %vm154_vm0, %v377_v1, 0  ;;  %v162_v6 = vsel %vm154_vm0, %v379_v5, 0  ;;  %v29_v9 = vld [vmem:[%s555_s0] sm:$0xf]  ;;  %v165_v11 = vsel %vm154_vm0, %v381_v8, 0  ;;  %v382_v12 = vld [vmem:[%s556_s1 + $0x58] sm:$0xff]  }
   0x4   :  { %345 = vmatpush3.bf16.xpose.msra.mxu0 %v159_v4  ;;  %v285_v10 = vld [vmem:[%s558_s3] sm:$0xff]  ;;  %360 = vmatprep.mubr.msk.bf16.mxu0 %vm154_vm0, %v29_v9 }
   0x5   :  { %363 = vmatprep.subr.msk.bf16.mxu0 %vm154_vm0, %v378_v2  ;;  %287 = vperm.xlu1 %375, %v285_v10  }
   0xc   :  { %347 = vmatpush3.bf16.xpose.msra.mxu0 %v162_v6 }
   0xd   :  { %364 = vmatprep.subr.msk.bf16.mxu0 %vm154_vm0, %v380_v7 }
   0xe   :  { %11 = vsyncpa [#allocation6], 0  ;;  %v383_v13 = vld [vmem:[%s556_s1 + $0x18] sm:$0xff]   ;;  %v384_v15 = vld [vmem:[%s556_s1 + $0x60] sm:$0xff]   ;;  %v64_v27 = vlaneseq  ;;  %vm25_vm1 = vcmask 7168   ;;  %v425_v41 = vmov -inf  }
   0xf   :  { %v168_v14 = vsel %vm154_vm0, %v383_v13, 0  ;;  %v385_v16 = vld [vmem:[%s556_s1 + $0x20] sm:$0xff]   ;;  %v386_v18 = vld [vmem:[%s556_s1 + $0x68] sm:$0xff]   ;;  %v388_v21 = vld [vmem:[%s556_s1 + $0x70] sm:$0xff]   ;;  %26 = vst.msk [vmem:[#allocation2] sm:$0xff] %vm25_vm1, %v425_v41  ;;  %v426_v42 = vmov 0.0  }
  0x10   :  { %v171_v17 = vsel %vm154_vm0, %v385_v16, 0  ;;  %v387_v19 = vld [vmem:[%s556_s1 + $0x28] sm:$0xff]   ;;  %v389_v22 = vld [vmem:[%s556_s1 + $0x30] sm:$0xff]   ;;  %v390_v24 = vld [vmem:[%s556_s1 + $0x78] sm:$0xff]   ;;  %v65_v28 = vshrl.u32 %v64_v27, 7  ;;  %27 = vst.msk [vmem:[#allocation3] sm:$0xff] %vm25_vm1, %v426_v42 }
  0x11   :  { %v174_v20 = vsel %vm154_vm0, %v387_v19, 0  ;;  %v177_v23 = vsel %vm154_vm0, %v389_v22, 0  ;;  %v391_v25 = vld [vmem:[%s556_s1 + $0x38] sm:$0xff]   ;;  %v62_v30 = vld [vmem:[%s557_s2] sm:$0x3]  ;;  %28 = vst.msk [vmem:[#allocation4] sm:$0xff] %vm25_vm1, %v426_v42 }
  0x12   :  { %v180_v26 = vsel %vm154_vm0, %v391_v25, 0  ;;  %v66_v29 = vsub.s32 0, %v65_v28  ;;  %v70_v31 = vsub.s32 1, %v65_v28  ;;  %v279_v52 = vand.u32 127, %v64_v27  ;;  %s427_s1 = smov [#allocation5]  }
  0x13   :  { %s315_s2 = sshll.u32 %s427_s1, 4  ;;  %s316_s2 = int_to_ptr.vmem [resolvable:$true] %s315_s2 }
  0x14   :  { %349 = vmatpush3.bf16.xpose.msra.mxu0 %v165_v11  ;;  %v67_v32 = vrot.slane %v62_v30, %v66_v29  ;;  %v71_v33 = vrot.slane %v62_v30, %v70_v31  ;;  %v280_v53 = vadd.s32 128, %v279_v52  ;;  %s400_s29 = scalar_lea.vmem %s316_s2, 256  ;;  %p405_p1 = scmp.lt.s32.totalorder %s316_s2, %s316_s2 }
  0x15   :  { %365 = vmatprep.subr.msk.bf16.mxu0 %vm154_vm0, %v382_v12  ;;  %p401_p0 = scmp.ne.s32.totalorder %s316_s2, %s400_s29  ;;  %p406_p2 = scmp.lt.s32.totalorder %s400_s29, %s400_s29 }
  0x16   :  { %v250_v43 = vld [vmem:[#allocation2] sm:$0xff] }
  0x17   :  { %p407_p3 = por %p406_p2, %p405_p1 }
  0x19   :  { %p408_p4 = pnand %p407_p3, %p401_p0 }
  0x1c   :  { %351 = vmatpush3.bf16.xpose.msra.mxu0 %v168_v14 }
  0x1d   :  { %366 = vmatprep.subr.msk.bf16.mxu0 %vm154_vm0, %v384_v15 }
  0x24   :  { %353 = vmatpush3.bf16.xpose.msra.mxu0 %v171_v17 }
  0x25   :  { %367 = vmatprep.subr.msk.bf16.mxu0 %vm154_vm0, %v386_v18 }
  0x2c   :  { %355 = vmatpush3.bf16.xpose.msra.mxu0 %v174_v20 }
  0x2d   :  { %368 = vmatprep.subr.msk.bf16.mxu0 %vm154_vm0, %v388_v21 }
  0x34   :  { %357 = vmatpush3.bf16.xpose.msra.mxu0 %v177_v23 }
  0x35   :  { %369 = vmatprep.subr.msk.bf16.mxu0 %vm154_vm0, %v390_v24 }
  0x3c   :  { %359 = vmatpush3.bf16.xpose.msra.mxu0 %v180_v26 }
  0x43   :  { %361 = vmatmul.mubr.msk.bf16.vlgmr.msra.gmra.mrb[0].mxu0 %vm154_vm0, %v29_v9 }
  0x84   :  { %v288_v54 = vpop.permute.xlu1 %287 }
  0x85   :  { %vm289_vm2 = vcmp.eq.s32.totalorder %v279_v52, %v288_v54  ;;  %vm290_vm3 = vcmp.eq.s32.totalorder %v280_v53, %v288_v54 }
 0x116   :  { %v240_v34 = vpop.f32.mrb[0].mxu0 }
 0x117   :  { %v241_v35 = vadd.f32 %v240_v34, %v67_v32  ;;  %v242_v36 = vpop.f32.mrb[1].mxu0 }
 0x118   :  { %v243_v37 = vadd.f32 %v242_v36, %v71_v33  ;;  %v244_v38 = vpop.f32.mrb[2].mxu0 }
 0x119   :  { %248 = vst [vmem:[#allocation5] sm:$0xff] %v241_v35  ;;  %v245_v39 = vpop.f32.mrb[3].mxu0  ;;  %v291_v58 = vsel %vm289_vm2, %v241_v35, 0.0 }
 0x11a   :  { %249 = vst [vmem:[#allocation5 + $0x8] sm:$0xff] %v243_v37  ;;  %v251_v40 = vmax.f32 %v241_v35, %v243_v37  ;;  %v292_v59 = vsel %vm290_vm3, %v243_v37, 0.0 }
 0x11b   :  { %v293_v60 = vadd.f32 %v292_v59, %v291_v58 }
 0x11c   :  { %252 = vmax.xlane.f32.xlu0 %v251_v40 }
 0x1a9   :  { %v253_v44 = vpop.xlane.xlu0 %252 }
 0x1aa   :  { %v254_v45 = vmax.f32 %v250_v43, %v253_v44 }
 0x1ac   :  { %v256_v46 = vsub.f32 %v250_v43, %v254_v45  ;;  %277 = vst.msk [vmem:[#allocation2] sm:$0xff] %vm25_vm1, %v254_v45  ;;  %262 = vperm.xlu0 %374, %v254_v45  }
 0x22b   :  { %v263_v47 = vpop.permute.xlu0 %262 }
 0x22c   :  { %v265_v48 = vsub.f32 %v241_v35, %v263_v47  ;;  %v266_v49 = vsub.f32 %v243_v37, %v263_v47 }
 0x22e   :  { %v267_v50 = vmul.f32 1.442695, %v265_v48  ;;  %v269_v51 = vmul.f32 1.442695, %v266_v49 }
 0x230   :  { %392 = vpow2.f32 %v267_v50 }
 0x231   :  { %394 = vpow2.f32 %v269_v51 }
 0x23a   :  { %v393_v55 = vpop.eup %392 }
 0x23b   :  { %v395_v56 = vpop.eup %394 }
 0x23c   :  { %v271_v57 = vadd.f32 %v395_v56, %v393_v55 }
 0x23e   :  { %272 = vadd.xlane.f32.xlu1 %v271_v57 }
 0x242   :  { %294 = vadd.xlane.f32.xlu1 %v293_v60 }
 0x243   :  { %411 = shalt.err (!%p408_p4)
}
 0x244   :  { %s412_s7 = scalar_lea.hbm %s559_s4, 256 }
 0x245   :  { %p413_p5 = scmp.ne.s32.totalorder %s559_s4, %s412_s7  ;;  %p416_p6 = scmp.lt.u32.totalorder %s412_s7, %s559_s4 }
 0x247   :  { %p418_p7 = pnand %p416_p6, %p413_p5 }
 0x249   :  { %421 = shalt.err (!%p418_p7)
}
 0x24a   :  { %318 = dma.vmem_to_hbm [thread:$0]  %s316_s2, 256, %s559_s4, [#allocation6]   ;;  %v257_v61 = vmul.f32 1.442695, %v256_v46  ;;  %v255_v63 = vld [vmem:[#allocation3] sm:$0xff]  ;;  %v284_v3 = vld [vmem:[#allocation4] sm:$0xff] }
 0x24b   :  { %v301_v9 = vld [vmem:[#allocation2] sm:$0xff] }
 0x24c   :  { %396 = vpow2.f32 %v257_v61 }
 0x256   :  { %v397_v62 = vpop.eup %396 }
 0x257   :  { %v259_v0 = vmul.f32 %v397_v62, %v255_v63 }
 0x2cb   :  { %v273_v1 = vpop.xlane.xlu1 %272 }
 0x2cc   :  { %v274_v2 = vadd.f32 %v273_v1, %v259_v0 }
 0x2ce   :  { %276 = vst.msk [vmem:[#allocation3] sm:$0xff] %vm25_vm1, %v274_v2 }
 0x2cf   :  { %v295_v4 = vpop.xlane.xlu1 %294 }
 0x2d0   :  { %v296_v5 = vadd.f32 %v295_v4, %v284_v3 }
 0x2d2   :  { %297 = vst.msk [vmem:[#allocation4] sm:$0xff] %vm25_vm1, %v296_v5 }
 0x2d5   :  { %v302_v6 = vld [vmem:[#allocation3] sm:$0xff] }
 0x2d6   :  { %398 = vlog2.f32 %v302_v6 }
 0x2d9   :  { %v306_v11 = vld [vmem:[#allocation4] sm:$0xff] }
 0x2e0   :  { %v399_v7 = vpop.eup %398 }
 0x2e1   :  { %v304_v8 = vmul.f32 0.6931472, %v399_v7 }
 0x2e3   :  { %v305_v10 = vadd.f32 %v304_v8, %v301_v9 }
 0x2e5   :  { %v307_v12 = vsub.f32 %v305_v10, %v306_v11 }
 0x2e7   :  { %308 = vst.msk [vmem:[%s560_s5] sm:$0xff] %vm25_vm1, %v307_v12 }
 0x2e8   :  { %422 = dma.done.wait [#allocation6], 256  }
 0x2e9   :  { %423 = vsyncadd [#allocation6], 4294967040 }
 0x2ea   :  { %326 = vsyncpa [#allocation6], 1 }

</bundles_post_ra>
